<compile_context>
chip_gen: v5e
topology: v5e:2x2
jax: 0.10.0
libtpu: 0.0.40
codegen_flags: <defaults>
</compile_context>

<pallas_src>
import jax
import jax.numpy as jnp
from jax import lax
from jax.experimental import pallas as pl
from jax.experimental.pallas import tpu as pltpu

EPS = 1e-5  # nn.BatchNorm2d default


# ---------------------------------------------------------------------------
# Kernel 1: per-block partial input statistics (Gram matrix + column sums).
# ---------------------------------------------------------------------------
def stats_kernel(x_ref, gram_ref, colsum_ref):
    """x_ref: (1, Cin, t_hw); gram_ref: (1, 1, Cin, Cin); colsum_ref: (1, 1, Cin, 1)."""
    x = x_ref[0]  # (Cin, t_hw)
    # X @ X^T, contracting the (lane) spatial axis on the MXU.
    gram_ref[0, 0] = lax.dot_general(
        x, x, (((1,), (1,)), ((), ())), preferred_element_type=jnp.float32)
    colsum_ref[0, 0] = jnp.sum(x, axis=1, keepdims=True)  # (Cin, 1)


# ---------------------------------------------------------------------------
# Kernel 2: fused 1x1 conv (BN folded into weights) + ReLU epilogue.
# ---------------------------------------------------------------------------
def fused_conv_bn_relu_kernel(x_ref, w_ref, b_ref, o_ref):
    """x_ref: (1, Cin, t_hw); w_ref: (Cout, Cin); b_ref: (Cout, 1); o_ref: (1, Cout, t_hw)."""
    x = x_ref[0]                                                     # (Cin, t_hw)
    y = jnp.dot(w_ref[...], x, preferred_element_type=jnp.float32)   # (Cout, t_hw)
    o_ref[0] = jnp.maximum(y + b_ref[...], 0.0).astype(o_ref.dtype)


# ---------------------------------------------------------------------------
# Wrapper
# ---------------------------------------------------------------------------
def conv_bn_relu(x_nchw, weight, bias, gamma, beta, *, t_hw=512):
    """x_nchw: (N, Cin, H, W); weight: (Cout, Cin, 1, 1); bias/gamma/beta: (Cout,).

    The conv bias is accepted for API parity but cancels exactly under the
    BatchNorm mean subtraction, so it is never applied (zero extra work).
    """
    # TODO(synk): only the module defaults (kernel_size=1, stride=1, padding=0,
    # dilation=1) are implemented; a general spatial convolution is not.
    del bias
    N, Cin, H, W = x_nchw.shape
    Cout = weight.shape[0]
    HW = H * W
    M = N * HW

    # Spatial (lane) tile: as large as practical; full H*W for small inputs.
    t_hw = HW if HW <= t_hw else t_hw
    assert HW % t_hw == 0 and (t_hw == HW or t_hw % 128 == 0), \
        "spatial tile must divide H*W and be 128-lane aligned"
    nj = HW // t_hw
    grid = (N, nj)

    x3 = x_nchw.reshape(N, Cin, HW).astype(jnp.float32)   # NCHW-native, no transpose
    w2 = weight.reshape(Cout, Cin).astype(jnp.float32)
    gamma = gamma.astype(jnp.float32)
    beta = beta.astype(jnp.float32)

    # ---- Pass 1: per-block partial Gram / column-sum of x ------------------
    gram_p, colsum_p = pl.pallas_call(
        stats_kernel,
        out_shape=(
            jax.ShapeDtypeStruct((N, nj, Cin, Cin), jnp.float32),
            jax.ShapeDtypeStruct((N, nj, Cin, 1), jnp.float32),
        ),
        grid_spec=pltpu.PrefetchScalarGridSpec(
            num_scalar_prefetch=0,
            grid=grid,
            in_specs=[pl.BlockSpec((1, Cin, t_hw), lambda n, j: (n, 0, j))],
            out_specs=[
                pl.BlockSpec((1, 1, Cin, Cin), lambda n, j: (n, j, 0, 0)),
                pl.BlockSpec((1, 1, Cin, 1), lambda n, j: (n, j, 0, 0)),
            ],
        ),
        compiler_params=pltpu.CompilerParams(
            dimension_semantics=("parallel", "parallel")),
    )(x3)

    # ---- Tiny wrapper math: batch stats -> folded BN scale/shift -----------
    gram = jnp.sum(gram_p, axis=(0, 1))        # (Cin, Cin)
    colsum = jnp.sum(colsum_p, axis=(0, 1))    # (Cin, 1)
    mean = (w2 @ colsum)[:, 0] / M             # E[conv(x)] (bias-free; bias cancels)
    ey2 = jnp.sum((w2 @ gram) * w2, axis=1) / M
    var = jnp.maximum(ey2 - mean * mean, 0.0)  # biased batch variance (PyTorch fwd)
    scale = gamma * lax.rsqrt(var + EPS)
    w_fold = w2 * scale[:, None]               # (Cout, Cin)
    b_fold = (beta - mean * scale).reshape(Cout, 1)

    # ---- Pass 2: recompute conv with folded BN + ReLU, write final output --
    # (bf16 MXU inputs would halve the dominant x read on v6e/v7x, but f32 is
    #  kept to stay within the 1e-4 tolerance of the f32 reference.)
    out3 = pl.pallas_call(
        fused_conv_bn_relu_kernel,
        out_shape=jax.ShapeDtypeStruct((N, Cout, HW), jnp.float32),
        grid_spec=pltpu.PrefetchScalarGridSpec(
            num_scalar_prefetch=0,
            grid=grid,
            in_specs=[
                pl.BlockSpec((1, Cin, t_hw), lambda n, j: (n, 0, j)),
                pl.BlockSpec((Cout, Cin), lambda n, j: (0, 0)),
                pl.BlockSpec((Cout, 1), lambda n, j: (0, 0)),
            ],
            out_specs=pl.BlockSpec((1, Cout, t_hw), lambda n, j: (n, 0, j)),
        ),
        compiler_params=pltpu.CompilerParams(
            dimension_semantics=("parallel", "parallel")),
    )(x3, w_fold, b_fold)

    return out3.reshape(N, Cout, H, W)


def reference(x_nchw, weight, bias, gamma, beta):
    """Pure-JAX reference of the PyTorch forward (training-mode BN)."""
    N, Cin, H, W = x_nchw.shape
    Cout = weight.shape[0]
    x2d = jnp.transpose(x_nchw, (0, 2, 3, 1)).reshape(-1, Cin)
    y = x2d @ weight.reshape(Cout, Cin).T + bias
    mean = jnp.mean(y, axis=0)
    var = jnp.mean((y - mean) ** 2, axis=0)  # biased, as PyTorch BN forward
    yhat = (y - mean) / jnp.sqrt(var + EPS)
    out = jnp.maximum(yhat * gamma + beta, 0.0)
    return jnp.transpose(out.reshape(N, H, W, Cout), (0, 3, 1, 2))


if __name__ == "__main__":
    key = jax.random.PRNGKey(0)
    k_x, k_w = jax.random.split(key)

    N, Cin, Cout, H, W = 2, 4, 8, 16, 16  # kernel_size=1, stride=1, padding=0

    x = jax.random.normal(k_x, (N, Cin, H, W), dtype=jnp.float32)

    # kaiming_normal_(a=1): gain = sqrt(2/(1+1^2)) = 1, fan_in = Cin*1*1
    std = 1.0 / jnp.sqrt(jnp.float32(Cin * 1 * 1))
    weight = jax.random.normal(k_w, (Cout, Cin, 1, 1), dtype=jnp.float32) * std
    bias = jnp.zeros((Cout,), jnp.float32)          # constant_(bias, 0)
    gamma = jnp.ones((Cout,), jnp.float32)          # BN affine defaults
    beta = jnp.zeros((Cout,), jnp.float32)

    out = conv_bn_relu(x, weight, bias, gamma, beta)
    out = jax.block_until_ready(out)

    ref = reference(x, weight, bias, gamma, beta)
    assert out.shape == (N, Cout, H, W)
    assert jnp.allclose(out, ref, atol=1e-4, rtol=1e-4), "mismatch vs reference"

    print("KERNEL_OK")
</pallas_src>

<mosaic_0001>
module attributes {stable_mosaic.version = 11 : i64} {
  func.func @stats_kernel(%arg0: i32, %arg1: i32, %arg2: memref<1x4x256xf32, #tpu.memory_space<vmem>>, %arg3: memref<1x1x4x4xf32, #tpu.memory_space<vmem>>, %arg4: memref<1x1x4x1xf32, #tpu.memory_space<vmem>>) attributes {dimension_semantics = [#tpu.dimension_semantics<parallel>, #tpu.dimension_semantics<parallel>], iteration_bounds = array<i64: 2, 1>, scalar_prefetch = 0 : i64, scratch_operands = 0 : i64, tpu.core_type = #tpu.core_type<tc>, window_params = [{transform_indices = @transform_0, window_bounds = array<i64: 1, 4, 256>}, {transform_indices = @transform_1, window_bounds = array<i64: 1, 1, 4, 4>}, {transform_indices = @transform_2, window_bounds = array<i64: 1, 1, 4, 1>}]} {
    %c0 = arith.constant 0 : index
    %c0_0 = arith.constant 0 : index
    %c0_1 = arith.constant 0 : index
    %0 = vector.load %arg2[%c0, %c0_0, %c0_1] : memref<1x4x256xf32, #tpu.memory_space<vmem>>, vector<1x4x256xf32>
    %1 = vector.shape_cast %0 : vector<1x4x256xf32> to vector<4x256xf32>
    %cst = arith.constant dense<0.000000e+00> : vector<4x4xf32>
    %2 = tpu.matmul %1, %1, %cst {dimension_numbers = #tpu.dot_dimension_numbers<[1], [1], [0], [0], [0, 0, 1, 0], [], []>} : vector<4x256xf32>, vector<4x256xf32>, vector<4x4xf32> -> vector<4x4xf32>
    %c0_2 = arith.constant 0 : index
    %c0_3 = arith.constant 0 : index
    %c0_4 = arith.constant 0 : index
    %c0_5 = arith.constant 0 : index
    %3 = vector.load %arg3[%c0_2, %c0_3, %c0_4, %c0_5] : memref<1x1x4x4xf32, #tpu.memory_space<vmem>>, vector<1x1x4x4xf32>
    %4 = vector.shape_cast %3 : vector<1x1x4x4xf32> to vector<4x4xf32>
    %5 = vector.shape_cast %2 : vector<4x4xf32> to vector<1x1x4x4xf32>
    tpu.vector_store %arg3[%c0_2, %c0_3, %c0_4, %c0_5], %5 {strides = array<i32>} : memref<1x1x4x4xf32, #tpu.memory_space<vmem>>, vector<1x1x4x4xf32>,
    %cst_6 = arith.constant dense<0.000000e+00> : vector<4xf32>
    %6 = vector.multi_reduction <add>, %1, %cst_6 [1] : vector<4x256xf32> to vector<4xf32>
    %7 = vector.shape_cast %6 : vector<4xf32> to vector<4x1xf32>
    %c0_7 = arith.constant 0 : index
    %c0_8 = arith.constant 0 : index
    %c0_9 = arith.constant 0 : index
    %c0_10 = arith.constant 0 : index
    %8 = vector.load %arg4[%c0_7, %c0_8, %c0_9, %c0_10] : memref<1x1x4x1xf32, #tpu.memory_space<vmem>>, vector<1x1x4x1xf32>
    %9 = vector.shape_cast %8 : vector<1x1x4x1xf32> to vector<4x1xf32>
    %10 = vector.shape_cast %7 : vector<4x1xf32> to vector<1x1x4x1xf32>
    tpu.vector_store %arg4[%c0_7, %c0_8, %c0_9, %c0_10], %10 {strides = array<i32>} : memref<1x1x4x1xf32, #tpu.memory_space<vmem>>, vector<1x1x4x1xf32>,
    return
  }
  func.func @transform_0(%arg0: i32, %arg1: i32) -> (i32, i32, i32) {
    %c0_i32 = arith.constant 0 : i32
    %c0_i32_0 = arith.constant 0 : i32
    return %arg0, %c0_i32, %arg1 : i32, i32, i32
  }
  func.func @transform_1(%arg0: i32, %arg1: i32) -> (i32, i32, i32, i32) {
    %c0_i32 = arith.constant 0 : i32
    %c0_i32_0 = arith.constant 0 : i32
    %c0_i32_1 = arith.constant 0 : i32
    return %arg0, %arg1, %c0_i32, %c0_i32_0 : i32, i32, i32, i32
  }
  func.func @transform_2(%arg0: i32, %arg1: i32) -> (i32, i32, i32, i32) {
    %c0_i32 = arith.constant 0 : i32
    %c0_i32_0 = arith.constant 0 : i32
    %c0_i32_1 = arith.constant 0 : i32
    return %arg0, %arg1, %c0_i32, %c0_i32_0 : i32, i32, i32, i32
  }
}

</mosaic_0001>

<bundles_post_ra>
// kernel: tpu_custom_call.1
= control target key start
LH: loop header
LB: loop body
LE: loop exit
PB: predicated region body
PF: predicated region fallthrough
CT: control target
= control target key end

     0   :  { %8 = vsyncpa [#allocation3], 0  ;;  %s740_s0 = inlined_call_operand.hbm [shape: f32[2,4,256], index: 0, kind: input, shape index: {}]   ;;  %s741_s1 = inlined_call_operand.hbm [shape: f32[2,1,4,4], index: 1, kind: output, shape index: {0}]   ;;  %s742_s2 = inlined_call_operand.vmem [shape: f32[2,1,4,1], index: 2, kind: output, shape index: {1}]  }
   0x1   :  { %10 = vsyncpa [#allocation3 + $0x1], 0 }
   0x2   :  { %11 = vsyncpa [#allocation4], 0 }
   0x3   :  { %13 = vsyncpa [#allocation4 + $0x1], 0  ;;  %s614_s9 = smov 0   ;;  %s616_s10 = smov 0  }
   0x4   :  { %s618_s11 = smov 0   ;;  %s620_s12 = smov 0  }
   0x5   :  { %s622_s13 = smov 0   ;;  %s624_s14 = smov 0  }
   0x6 LB: > { %s407_s15 = sadd.s32 4294967295, %s597_s14   ;;  %s408_s16 = sadd.s32 4294967294, %s597_s14   ;;  %s597_s14 = sphi %s624_s14, %s19_s14   ;;  %s593_s13 = sphi %s622_s13, %s751_s13   ;;  %s589_s12 = sphi %s620_s12, %s750_s12   ;;  %s585_s11 = sphi %s618_s11, %s749_s11   ;;  %s581_s10 = sphi %s616_s10, %s748_s10   ;;  %s577_s9 = sphi %s614_s9, %s747_s9  }
   0x7   : > { %s31_s17 = sadd.s32 1, %s593_s13  ;;  %s40_s18 = sadd.s32 1, %s585_s11 }
   0x8   : > { %p33_p0 = scmp.ge.s32.totalorder %s31_s17, 2  ;;  %p47_p1 = scmp.ne.s32.totalorder %s585_s11, %s581_s10 }
   0x9   : > { %p48_p2 = scmp.eq.s32.totalorder %s597_s14, 0  ;;  %p53_p3 = scmp.ne.s32.totalorder %s581_s10, %s577_s9 }
   0xa   : > { %s753_s17 = smov (%p33_p0, %s31_s17), 0  ;;  %p54_p5 = scmp.eq.s32.totalorder %s407_s15, 0 }
   0xb   : > { %p655_p4 = por %p48_p2, %p47_p1  ;;  %s35_s20 = ssub.s32 %s593_s13, %s753_s17 }
   0xc   : > { %p79_p6 = scmp.eq.s32.totalorder %s407_s15, 1  ;;  %p38_p7 = scmp.eq.s32.totalorder %s35_s20, 0 }
   0xd   : > { %p661_p8 = por %p54_p5, %p53_p3  ;;  %p85_p10 = scmp.eq.s32.totalorder %s408_s16, 1 }
   0xe   : > { %p665_p9 = por %p79_p6, %p47_p1  ;;  %p410_p12 = scmp.ge.s32.totalorder %s597_s14, 2 }
   0xf   : > { %s670_s23 = scalar_select %p38_p7, %s585_s11, %s40_s18  }
  0x10   : > { %p672_p11 = por %p85_p10, %p53_p3  ;;  %p435_p13 = scmp.lt.s32.totalorder %s597_s14, 2 }
  0x11   : > { %s133_s25 = sand.u32 1, %s585_s11   ;;  %s422_s27 = sshll.u32 %s593_s13, 3 }
  0x12   : > { %s411_s26 = sshll.u32 %s133_s25, 3  ;;  %s144_s30 = scalar_lea.hbm %s740_s0, %s422_s27 }
  0x13   : > { %s137_s3 = scalar_lea.vmem [#allocation2], %s411_s26  ;;  %s146_s5 = sshll.u32 %s144_s30, 4  ;;  %s147_s5 = int_to_ptr.hbm [resolvable:$true] %s146_s5 }
  0x14   : > { %s148_s4 = sshll.u32 %s137_s3, 4  ;;  %p428_p0 = pnand %p435_p13, %p655_p4  ;;  %s149_s4 = int_to_ptr.vmem [resolvable:$true] %s148_s4 }
  0x15   : > { %p414_p1 = scmp.ge.s32.totalorder %s597_s14, 1  ;;  %p153_p2 = scmp.lt.s32.totalorder %s597_s14, 3 }
  0x16   : > { %s134_s6 = scalar_lea.sflag [#allocation3], %s133_s25 }
  0x17   : > { %430 = dma.hbm_to_vmem [thread:$0]  (!%p428_p0), %s147_s5, 128, %s149_s4, %s134_s6  }
  0x18   : > { %p154_p3 = pnand %p414_p1, %p153_p2 }
  0x19   : > { %s688_s7 = sand.u32 (!%p154_p3), 1, %s581_s10  }
  0x1a   : > { %157 = sbr.rel (%p154_p3) target bundleno = 183 (0xb7), region = 24  ;;  %s415_s8 = sshll.u32 (!%p154_p3), %s688_s7, 3 }
  0x1b   : > { %s160_s15 = scalar_lea.sflag (!%p154_p3), [#allocation3], %s688_s7  ;;  %s163_s16 = scalar_lea.vmem (!%p154_p3), [#allocation2], %s415_s8 }
  0x1f   : > { %568 = dma.done.wait (%p661_p8), %s160_s15, 128  }
  0x20   : > { %570 = vsyncadd (%p661_p8), %s160_s15, 4294967168  ;;  %v200_v0 = vld [vmem:[%s163_s16] sm:$0xff]  ;;  %vm259_vm0 = vcmask 1043456   ;;  %p193_p4 = scmp.lt.s32.totalorder %s589_s12, 1  ;;  %s416_s19 = sshll.u32 %s688_s7, 2  ;;  %vm265_vm1 = vcmask 3072  }
  0x21   : > { %202 = vst [vmem:[#allocation1] ss:$2 sm:$0xff] %v200_v0  ;;  %s419_s20 = sshll.u32 %s589_s12, 2  ;;  %s182_s3 = scalar_lea.vmem [#allocation5], %s416_s19  ;;  %vm252_vm2 = vcmask 27648  }
  0x22   : > { %s194_s18 = scalar_select %p193_p4, %s589_s12, 1 }
  0x23   : > { %s286_s27 = scalar_lea.hbm %s741_s1, %s419_s20  ;;  %s288_s4 = sshll.u32 %s182_s3, 4  ;;  %s289_s4 = int_to_ptr.vmem [resolvable:$true] %s288_s4 }
  0x24   : > { %s417_s21 = sshll.u32 %s194_s18, 2  ;;  %s290_s5 = sshll.u32 %s286_s27, 4  ;;  %s291_s5 = int_to_ptr.hbm [resolvable:$true] %s290_s5 }
  0x25   : > { %s199_s30 = scalar_lea.vmem %s742_s2, %s417_s21  ;;  %s268_s12 = scalar_lea.sflag [#allocation4], %s688_s7 }
  0x26   : > { %s529_s6 = sshra.s32 %s291_s5, 4  ;;  %s535_s18 = scalar_lea.hbm %s741_s1, 8  ;;  %s530_s6 = int_to_ptr.hbm [resolvable:$true] %s529_s6 }
  0x27   : > { %s531_s8 = scalar_lea.hbm %s530_s6, 4  ;;  %p536_p8 = scmp.lt.s32.totalorder %s530_s6, %s741_s1 }
  0x28   : > { %v203_v1 = vld.sshfl [vmem:[#allocation1] sm:$0xff pattern:$0x75316420]  ;;  %v204_v2 = vld.sshfl [vmem:[#allocation1 + $0x8] sm:$0xff pattern:$0x75316420]  ;;  %p532_p5 = scmp.ne.s32.totalorder %s530_s6, %s531_s8  ;;  %p537_p10 = scmp.lt.s32.totalorder %s535_s18, %s531_s8 }
  0x29   : > { %207 = vst [vmem:[#allocation1] ss:$2 sm:$0xff] %v200_v0 }
  0x2a   : > { %p533_p6 = pnand %p532_p5, %p665_p9  ;;  %p538_p13 = por %p537_p10, %p536_p8 }
  0x2c   : > { %p534_p7 = pneg %p533_p6 }
  0x2e   : > { %p539_p0 = pnand %p538_p13, %p534_p7 }
  0x30   : > { %v208_v3 = vld.sshfl [vmem:[#allocation1] sm:$0xff pattern:$0x75316420]  ;;  %v209_v4 = vld.sshfl [vmem:[#allocation1 + $0x8] sm:$0xff pattern:$0x75316420] }
  0x31   : > { %227 = vmatpush.xpose.msra.mxu0 %v208_v3  ;;  %247 = vmatpush.xpose.msra.mxu1 %v209_v4  ;;  %254 = vst [vmem:[#allocation1] ss:$2 sm:$0xff] %v200_v0 }
  0x34   : > { %228 = vmatmul.f32.vlgmr.msra.gmra.mxu0 %v203_v1  ;;  %248 = vmatmul.f32.vlgmr.msra.gmra.mxu1 %v204_v2 }
  0x38   : > { %v255_v5 = vld.sshfl [vmem:[#allocation1] sm:$0xff pattern:$0x75316420]  ;;  %v256_v6 = vld.sshfl [vmem:[#allocation1 + $0x8] sm:$0xff pattern:$0x75316420] }
  0x39   : > { %v260_v7 = vsel %vm259_vm0, %v255_v5, 0.0  ;;  %v261_v8 = vsel %vm259_vm0, %v256_v6, 0.0 }
  0x3a   : > { %v262_v9 = vadd.f32 %v261_v8, %v260_v7 }
  0x3c   : > { %263 = vadd.xlane.f32.xlu0 %v262_v9 }
  0xaf   : > { %v264_v10 = vpop.xlane.xlu0 %263 }
  0xb0   : > { %266 = vst.msk [vmem:[%s199_s30] sm:$0xf] %vm265_vm1, %v264_v10 }
  0xb1   : > { %v229_v11 = vpop.f32.mrf.mxu0  ;;  %v249_v12 = vpop.f32.mrf.mxu1 }
  0xb2   : > { %v250_v13 = vadd.f32 %v249_v12, %v229_v11 }
  0xb4   : > { %253 = vst.msk [vmem:[%s182_s3] sm:$0xf] %vm252_vm2, %v250_v13 }
  0xb5   : > { %542 = shalt.err (!%p539_p0)
}
  0xb6   : > { %425 = dma.vmem_to_hbm [thread:$0]  (%p665_p9), %s289_s4, 64, %s291_s5, %s268_s12  }
  0xb7 PF: > { %s305_s7 = sand.u32 1, %s577_s9   ;;  %p432_p1 = pnand %p410_p12, %p672_p11 }
  0xb8   : > { %s306_s21 = scalar_lea.sflag [#allocation4], %s305_s7 }
  0xb9   : > { %p433_p2 = pneg %p432_p1 }
  0xbb   : > { %572 = dma.done.wait (%p433_p2), %s306_s21, 64  }
  0xbc   : > { %574 = vsyncadd (%p433_p2), %s306_s21, 4294967232  ;;  %s19_s14 = sadd.s32 1, %s597_s14   ;;  %s747_s9 = smov %s581_s10 }
  0xbd   : > { %p16_p3 = scmp.ge.s32.totalorder %s19_s14, 4   ;;  %s748_s10 = smov %s585_s11 }
  0xbe   : > { %s749_s11 = smov %s670_s23  ;;  %s750_s12 = smov %s593_s13 }
  0xbf   : > { %s751_s13 = smov %s753_s17  ;;  %18 = sbr.rel (!%p16_p3) target bundleno = 6 (0x6), region = 81 }
  0xc4   :  { %322 = vsyncpa [#allocation3], 1 }
  0xc5   :  { %324 = vsyncpa [#allocation3 + $0x1], 1 }
  0xc6   :  { %325 = vsyncpa [#allocation4], 1 }
  0xc7   :  { %327 = vsyncpa [#allocation4 + $0x1], 1 }

</bundles_post_ra>
